<compile_context>
chip_gen: v5e
topology: v5e:2x2
jax: 0.10.0
libtpu: 0.0.40
codegen_flags: <defaults>
</compile_context>

<pallas_src>
import jax
import jax.numpy as jnp
from jax.experimental import pallas as pl
from jax.experimental.pallas import tpu as pltpu


_DEFAULT_LEAK = 0.1
_MIN_PALLAS_ELEMS = 1024          # below ~1 f32 vreg, let XLA fuse it
_MIN_BLOCK_BYTES = 512 * 1024     # never shrink blocks below this just to add grid steps
_LANE_CANDIDATES = (1024, 512, 256, 128)


def _device_block_config():
    """(target_block_bytes, min_grid_steps, vmem_limit_bytes) per TPU generation."""
    kind = ""
    try:
        kind = jax.devices()[0].device_kind.lower()
    except Exception:  # defensive: fall through to conservative defaults
        pass
    if "v7" in kind:
        # ~3.2 TB/s HBM: 8 MiB blocks keep the ~0.35us/step overhead <~8%.
        # in+out double-buffered = 32 MiB == default scoped VMEM limit -> raise it.
        return 8 * 1024 * 1024, 4, 40 << 20
    if "v6" in kind:
        # ~1.4 TB/s: 4 MiB blocks; 16 MiB double-buffered sits under the 32 MiB default.
        return 4 * 1024 * 1024, 2, None
    # v5e / unknown: 2 MiB blocks; 8 MiB double-buffered under the 16 MiB default.
    return 2 * 1024 * 1024, 2, None


def _lrelu_kernel(leak_ref, x_ref, o_ref):
    # leak_ref: (1,) f32 scalar in SMEM; x_ref/o_ref: (block_rows, lane) VMEM tiles.
    x = x_ref[...]
    leak = leak_ref[0].astype(x_ref.dtype)     # avoid f32 promotion of bf16 tiles
    o_ref[...] = jnp.maximum(x, x * leak).astype(o_ref.dtype)


@jax.jit
def _lrelu_impl(x, leak):
    orig_shape = x.shape
    orig_dtype = x.dtype
    n = x.size
    if n == 0:
        return x

    if not jnp.issubdtype(orig_dtype, jnp.floating):
        # Match torch promotion semantics (int tensor * python float -> float32).
        xf = x.astype(jnp.float32)
        return jnp.maximum(xf, leak.astype(jnp.float32) * xf)

    # Widest lane-dense last dim that divides the element count exactly.
    lane = next((c for c in _LANE_CANDIDATES if n % c == 0), None)

    if n < _MIN_PALLAS_ELEMS or lane is None:
        # Tiny or irregular (not a multiple of 128): a fused XLA maximum already hits
        # the 2N-byte HBM roofline; pad/slice/concat to feed Pallas would only add
        # full-array HBM round trips.
        return jnp.maximum(x, leak.astype(orig_dtype) * x)

    itemsize = jnp.dtype(orig_dtype).itemsize
    # dtype-aware sublane packing: 8 rows/vreg for 32-bit, 16 for 16-bit, 32 for 8-bit.
    sublane = 8 * max(1, 4 // itemsize)

    rows = n // lane
    x2d = x.reshape(rows, lane)

    target_block_bytes, min_steps, vmem_limit = _device_block_config()
    bytes_per_row = lane * itemsize

    # ~target_block_bytes per block, rounded down to a sublane multiple.
    block_rows = max(sublane, (target_block_bytes // bytes_per_row) // sublane * sublane)

    # Do not collapse to one grid step if blocks can stay >= _MIN_BLOCK_BYTES:
    # grid=(1,) disables DMA/compute pipelining and (on v7x) megacore sharding.
    min_block_rows = max(sublane,
                         pl.cdiv(_MIN_BLOCK_BYTES, bytes_per_row * sublane) * sublane)
    for steps in sorted({min_steps, 2}, reverse=True):
        cap = (rows // steps) // sublane * sublane
        if cap >= min_block_rows:
            block_rows = min(block_rows, cap)
            break
    if block_rows >= rows:
        block_rows = rows            # single block == full array dim (small inputs only)

    grid = (pl.cdiv(rows, block_rows),)          # masked ragged last block if uneven
    leak_arr = leak.astype(jnp.float32).reshape((1,))
    bytes_accessed = 2 * n * itemsize            # one read + one write of the slab

    out2d = pl.pallas_call(
        _lrelu_kernel,
        out_shape=jax.ShapeDtypeStruct((rows, lane), orig_dtype),
        grid_spec=pltpu.PrefetchScalarGridSpec(
            num_scalar_prefetch=0,
            grid=grid,
            in_specs=[
                pl.BlockSpec(memory_space=pltpu.MemorySpace.SMEM),     # leak scalar
                pl.BlockSpec((block_rows, lane), lambda i: (i, 0)),    # x tile
            ],
            out_specs=pl.BlockSpec((block_rows, lane), lambda i: (i, 0)),
        ),
        compiler_params=pltpu.CompilerParams(
            dimension_semantics=("parallel",),   # shard grid steps across TCs on v7x
            vmem_limit_bytes=vmem_limit,
        ),
        cost_estimate=pl.CostEstimate(
            flops=2 * n,
            transcendentals=0,
            bytes_accessed=bytes_accessed,
        ),
    )(leak_arr, x2d)

    return out2d.reshape(orig_shape)


def lrelu_custom(x: jax.Array, leak: float = _DEFAULT_LEAK) -> jax.Array:
    """Elementwise max(x, leak * x); semantics match LReluCustom.forward."""
    return _lrelu_impl(x, jnp.float32(leak))


if __name__ == "__main__":
    key = jax.random.PRNGKey(0)

    # Primary demo: NCHW conv-style activation (Pallas path, lane-aligned).
    x = jax.random.normal(key, (2, 4, 16, 16), dtype=jnp.float32)
    out = jax.block_until_ready(lrelu_custom(x))
    ref = jnp.maximum(x, _DEFAULT_LEAK * x)
    assert out.shape == x.shape and out.dtype == x.dtype
    assert jnp.allclose(out, ref), "f32 mismatch vs reference"

    k1, k2, k3 = jax.random.split(key, 3)

    # Larger lane-aligned input: exercises the multi-step pipelined grid.
    xl = jax.random.normal(k1, (2, 8, 256, 256), dtype=jnp.float32)
    outl = jax.block_until_ready(lrelu_custom(xl))
    assert jnp.allclose(outl, jnp.maximum(xl, _DEFAULT_LEAK * xl)), "large f32 mismatch"

    # bf16 path (leak cast to the tile dtype inside the kernel).
    xb = jax.random.normal(k2, (2, 4, 16, 16), dtype=jnp.bfloat16)
    outb = jax.block_until_ready(lrelu_custom(xb))
    refb = jnp.maximum(xb, jnp.bfloat16(_DEFAULT_LEAK) * xb)
    assert outb.dtype == jnp.bfloat16
    assert jnp.allclose(outb.astype(jnp.float32), refb.astype(jnp.float32),
                        atol=1e-2), "bf16 mismatch"

    # Irregular element count (not a multiple of 128): jnp fallback path (no pad/slice).
    xi = jax.random.normal(k3, (3, 5, 7), dtype=jnp.float32)
    outi = jax.block_until_ready(lrelu_custom(xi))
    assert jnp.allclose(outi, jnp.maximum(xi, _DEFAULT_LEAK * xi)), "irregular mismatch"

    print("KERNEL_OK")
</pallas_src>

<mosaic_0001>
module attributes {stable_mosaic.version = 11 : i64} {
  func.func @_lrelu_kernel(%arg0: i32, %arg1: memref<1xf32, #tpu.memory_space<smem>>, %arg2: memref<2x1024xf32, #tpu.memory_space<vmem>>, %arg3: memref<2x1024xf32, #tpu.memory_space<vmem>>) attributes {dimension_semantics = [#tpu.dimension_semantics<parallel>], iteration_bounds = array<i64: 1>, scalar_prefetch = 0 : i64, scratch_operands = 0 : i64, tpu.core_type = #tpu.core_type<tc>, window_params = [{transform_indices = @transform_0, window_bounds = array<i64: 1>}, {transform_indices = @transform_1, window_bounds = array<i64: 2, 1024>}, {transform_indices = @transform_2, window_bounds = array<i64: 2, 1024>}]} {
    %c0 = arith.constant 0 : index
    %c0_0 = arith.constant 0 : index
    %0 = vector.load %arg2[%c0, %c0_0] : memref<2x1024xf32, #tpu.memory_space<vmem>>, vector<2x1024xf32>
    %c0_1 = arith.constant 0 : index
    %1 = memref.load %arg1[%c0_1] : memref<1xf32, #tpu.memory_space<smem>>
    %2 = vector.broadcast %1 : f32 to vector<2x1024xf32>
    %3 = arith.mulf %0, %2 : vector<2x1024xf32>
    %4 = arith.maximumf %0, %3 : vector<2x1024xf32>
    %c0_2 = arith.constant 0 : index
    %c0_3 = arith.constant 0 : index
    %5 = vector.load %arg3[%c0_2, %c0_3] : memref<2x1024xf32, #tpu.memory_space<vmem>>, vector<2x1024xf32>
    tpu.vector_store %arg3[%c0_2, %c0_3], %4 {strides = array<i32>} : memref<2x1024xf32, #tpu.memory_space<vmem>>, vector<2x1024xf32>,
    return
  }
  func.func @transform_0(%arg0: i32) -> i32 {
    %c0_i32 = arith.constant 0 : i32
    %c0_i32_0 = arith.constant 0 : i32
    return %c0_i32 : i32
  }
  func.func @transform_1(%arg0: i32) -> (i32, i32) {
    %c0_i32 = arith.constant 0 : i32
    %c0_i32_0 = arith.constant 0 : i32
    return %arg0, %c0_i32 : i32, i32
  }
  func.func @transform_2(%arg0: i32) -> (i32, i32) {
    %c0_i32 = arith.constant 0 : i32
    %c0_i32_0 = arith.constant 0 : i32
    return %arg0, %c0_i32 : i32, i32
  }
}

</mosaic_0001>

<bundles_post_ra>
// kernel: _lrelu_impl.1
= control target key start
LH: loop header
LB: loop body
LE: loop exit
PB: predicated region body
PF: predicated region fallthrough
CT: control target
= control target key end

     0   :  { %s56_s0 = inlined_call_operand.<no memory space> [shape: f32[1], index: 0, kind: input, shape index: {}]   ;;  %s57_s1 = inlined_call_operand.vmem [shape: f32[2,1024], index: 1, kind: input, shape index: {}]   ;;  %s58_s2 = inlined_call_operand.vmem [shape: f32[2,1024], index: 2, kind: output, shape index: {}]  }
   0x1   :  { %v12_v0 = vld [vmem:[%s57_s1] sm:$0xff]  ;;  %v15_v1 = vstv %s56_s0  ;;  %v13_v2 = vld [vmem:[%s57_s1 + $0x8] sm:$0xff] }
   0x2   :  { %v16_v3 = vmul.f32 %v15_v1, %v12_v0  ;;  %v17_v4 = vmul.f32 %v15_v1, %v13_v2 }
   0x4   :  { %v18_v5 = vmax.f32 %v12_v0, %v16_v3  ;;  %v19_v6 = vmax.f32 %v13_v2, %v17_v4 }
   0x6   :  { %20 = vst [vmem:[%s58_s2] sm:$0xff] %v18_v5 }
   0x7   :  { %21 = vst [vmem:[%s58_s2 + $0x8] sm:$0xff] %v19_v6 }

</bundles_post_ra>
